<compile_context>
chip_gen: v6e
topology: v6e:2x2x1
jax: 0.10.0
libtpu: 0.0.40
codegen_flags: <defaults>
</compile_context>

<pallas_src>
import jax
import jax.numpy as jnp
from jax import lax
from jax.experimental import pallas as pl
from jax.experimental.pallas import tpu as pltpu


def _round_up(n, m):
    return (n + m - 1) // m * m


def _choose_tile(B):
    """Row-tile size. Single step for small B (minimal pad waste); >=2 steps for large B
    so the "parallel" grid axis can shard across v7x's two TensorCores."""
    if B <= 1024:
        return _round_up(B, 16)
    steps = max(2, pl.cdiv(B, 2048))
    return _round_up(pl.cdiv(B, steps), 256)


def critic_kernel(x_ref, w1_ref, b1_ref, w2_ref, b2_ref, w3_ref, b3_ref, o_ref):
    # x_ref: (TILE_B, in_dim) f32 ; w1/w2/w3_row: bf16 ; b1/b2: f32 ; b3: SMEM scalar.
    x = x_ref[...].astype(jnp.bfloat16)
    h1 = jnp.dot(x, w1_ref[...], preferred_element_type=jnp.float32) + b1_ref[...]
    h1 = jnp.maximum(h1, 0.0)
    h2 = jnp.dot(h1.astype(jnp.bfloat16), w2_ref[...],
                 preferred_element_type=jnp.float32) + b2_ref[...]
    h2 = jnp.maximum(h2, 0.0)
    # fc3 (single output unit) as a (1, hidden) x (TILE_B, hidden)^T matmul -> (1, TILE_B):
    # rides the idle MXU and gives a lane-dense, non-inflated output write.
    v = lax.dot_general(
        w3_ref[...], h2.astype(jnp.bfloat16),
        dimension_numbers=(((1,), (1,)), ((), ())),
        preferred_element_type=jnp.float32)              # (1, TILE_B)
    v = v + b3_ref[0, 0]
    o_ref[...] = v.reshape(o_ref.shape)                  # (1, 1, TILE_B)


def critic_forward(x, params):
    """x: (B, input_dim) f32. params: f32 weights in (in, out) layout. Returns (B, 1) f32."""
    B, in_dim = x.shape
    hidden = params["w1"].shape[1]

    TILE_B = _choose_tile(B)
    B_pad = _round_up(B, TILE_B)
    num_steps = B_pad // TILE_B

    x_in = x
    if B_pad != B:
        x_in = jnp.pad(x, ((0, B_pad - B), (0, 0)))       # only pass needed over x

    # MXU operands in bf16 (half the weight DMA bytes, MXU-native); biases stay f32.
    w1 = params["w1"].astype(jnp.bfloat16)
    w2 = params["w2"].astype(jnp.bfloat16)
    b1 = params["b1"].reshape(1, hidden).astype(jnp.float32)
    b2 = params["b2"].reshape(1, hidden).astype(jnp.float32)
    w3_row = params["w3"].reshape(1, hidden).astype(jnp.bfloat16)    # (1, hidden)
    b3 = params["b3"].reshape(1, 1).astype(jnp.float32)              # SMEM scalar

    const2 = lambda i: (0, 0)

    out = pl.pallas_call(
        critic_kernel,
        out_shape=jax.ShapeDtypeStruct((num_steps, 1, TILE_B), jnp.float32),
        grid=(num_steps,),
        in_specs=[
            pl.BlockSpec((TILE_B, in_dim), lambda i: (i, 0)),   # x: tiled over batch (f32)
            pl.BlockSpec((in_dim, hidden), const2),             # w1: VMEM-resident
            pl.BlockSpec((1, hidden), const2),                  # b1
            pl.BlockSpec((hidden, hidden), const2),             # w2: VMEM-resident
            pl.BlockSpec((1, hidden), const2),                  # b2
            pl.BlockSpec((1, hidden), const2),                  # w3 as a row vector
            pl.BlockSpec(memory_space=pltpu.MemorySpace.SMEM),  # b3 scalar
        ],
        out_specs=pl.BlockSpec((1, 1, TILE_B), lambda i: (i, 0, 0)),
        compiler_params=pltpu.CompilerParams(
            dimension_semantics=("parallel",),
        ),
    )(x_in, w1, b1, w2, b2, w3_row, b3)

    # (num_steps, 1, TILE_B) -> row-major flatten preserves batch order; drop pad rows.
    return out.reshape(-1)[:B].reshape(B, 1)


def init_params(key, input_dim, hidden_dim, output_dim=1):
    """Deterministic synthetic init (matches nn.Linear shapes, (in, out) layout, f32)."""
    k1, k2, k3, k4, k5, k6 = jax.random.split(key, 6)
    s = 0.05
    return {
        "w1": s * jax.random.normal(k1, (input_dim, hidden_dim), jnp.float32),
        "b1": s * jax.random.normal(k2, (hidden_dim,), jnp.float32),
        "w2": s * jax.random.normal(k3, (hidden_dim, hidden_dim), jnp.float32),
        "b2": s * jax.random.normal(k4, (hidden_dim,), jnp.float32),
        "w3": s * jax.random.normal(k5, (hidden_dim, output_dim), jnp.float32),
        "b3": s * jax.random.normal(k6, (output_dim,), jnp.float32),
    }


def critic_ref_f32(x, params):
    """Pure-JAX f32 reference of the PyTorch forward."""
    h1 = jax.nn.relu(x @ params["w1"] + params["b1"])
    h2 = jax.nn.relu(h1 @ params["w2"] + params["b2"])
    return h2 @ params["w3"] + params["b3"]


def critic_ref_bf16(x, params):
    """Reference matching the kernel's numerics: bf16 matmul operands, f32 accumulation."""
    xb = x.astype(jnp.bfloat16)
    h1 = jax.nn.relu(
        jnp.dot(xb, params["w1"].astype(jnp.bfloat16),
                preferred_element_type=jnp.float32) + params["b1"])
    h2 = jax.nn.relu(
        jnp.dot(h1.astype(jnp.bfloat16), params["w2"].astype(jnp.bfloat16),
                preferred_element_type=jnp.float32) + params["b2"])
    w3_row = params["w3"].reshape(1, -1).astype(jnp.bfloat16)
    v = lax.dot_general(w3_row, h2.astype(jnp.bfloat16),
                        dimension_numbers=(((1,), (1,)), ((), ())),
                        preferred_element_type=jnp.float32)
    return v.reshape(-1, 1) + params["b3"]


if __name__ == "__main__":
    input_dim = 32
    hidden_dim = 256   # default of the PyTorch module
    output_dim = 1

    key = jax.random.PRNGKey(0)
    kp, kx1, kx2, kx3 = jax.random.split(key, 4)
    params = init_params(kp, input_dim, hidden_dim, output_dim)

    # Small batch: single grid step, TILE_B = 16.
    x_small = jax.random.normal(kx1, (8, input_dim), jnp.float32)
    v_small = critic_forward(x_small, params)
    jax.block_until_ready(v_small)
    assert v_small.shape == (8, output_dim)
    assert jnp.allclose(v_small, critic_ref_bf16(x_small, params), atol=5e-4, rtol=1e-3)
    assert jnp.allclose(v_small, critic_ref_f32(x_small, params), atol=2e-2, rtol=2e-2)

    # Awkward batch: single step, TILE_B = 304 (minimal pad, no 512 blow-up).
    x_mid = jax.random.normal(kx2, (300, input_dim), jnp.float32)
    v_mid = critic_forward(x_mid, params)
    jax.block_until_ready(v_mid)
    assert v_mid.shape == (300, output_dim)
    assert jnp.allclose(v_mid, critic_ref_bf16(x_mid, params), atol=5e-4, rtol=1e-3)

    # Large batch: exercises multi-step grid (>=2 parallel steps) and batch padding.
    x_big = jax.random.normal(kx3, (3000, input_dim), jnp.float32)
    v_big = critic_forward(x_big, params)
    jax.block_until_ready(v_big)
    assert v_big.shape == (3000, output_dim)
    assert jnp.allclose(v_big, critic_ref_bf16(x_big, params), atol=5e-4, rtol=1e-3)

    print("KERNEL_OK")
</pallas_src>

<mosaic_0001>
module attributes {stable_mosaic.version = 11 : i64} {
  func.func @critic_kernel(%arg0: i32, %arg1: memref<16x32xf32, #tpu.memory_space<vmem>>, %arg2: memref<32x256xbf16, #tpu.memory_space<vmem>>, %arg3: memref<1x256xf32, #tpu.memory_space<vmem>>, %arg4: memref<256x256xbf16, #tpu.memory_space<vmem>>, %arg5: memref<1x256xf32, #tpu.memory_space<vmem>>, %arg6: memref<1x256xbf16, #tpu.memory_space<vmem>>, %arg7: memref<1x1xf32, #tpu.memory_space<smem>>, %arg8: memref<1x1x16xf32, #tpu.memory_space<vmem>>) attributes {dimension_semantics = [#tpu.dimension_semantics<parallel>], iteration_bounds = array<i64: 1>, scalar_prefetch = 0 : i64, scratch_operands = 0 : i64, tpu.core_type = #tpu.core_type<tc>, window_params = [{transform_indices = @transform_0, window_bounds = array<i64: 16, 32>}, {pipeline_mode = #tpu.pipeline_mode<synchronous>, transform_indices = @transform_1, window_bounds = array<i64: 32, 256>}, {pipeline_mode = #tpu.pipeline_mode<synchronous>, transform_indices = @transform_2, window_bounds = array<i64: 1, 256>}, {pipeline_mode = #tpu.pipeline_mode<synchronous>, transform_indices = @transform_3, window_bounds = array<i64: 256, 256>}, {pipeline_mode = #tpu.pipeline_mode<synchronous>, transform_indices = @transform_4, window_bounds = array<i64: 1, 256>}, {pipeline_mode = #tpu.pipeline_mode<synchronous>, transform_indices = @transform_5, window_bounds = array<i64: 1, 256>}, {transform_indices = @transform_6, window_bounds = array<i64: 1, 1>}, {transform_indices = @transform_7, window_bounds = array<i64: 1, 1, 16>}]} {
    %c0 = arith.constant 0 : index
    %c0_0 = arith.constant 0 : index
    %0 = vector.load %arg1[%c0, %c0_0] : memref<16x32xf32, #tpu.memory_space<vmem>>, vector<16x32xf32>
    %1 = arith.truncf %0 : vector<16x32xf32> to vector<16x32xbf16>
    %c0_1 = arith.constant 0 : index
    %c0_2 = arith.constant 0 : index
    %2 = vector.load %arg2[%c0_1, %c0_2] : memref<32x256xbf16, #tpu.memory_space<vmem>>, vector<32x256xbf16>
    %cst = arith.constant dense<0.000000e+00> : vector<16x256xf32>
    %3 = tpu.matmul %1, %2, %cst {dimension_numbers = #tpu.dot_dimension_numbers<[1], [0], [0], [1], [0, 0, 1, 1], [], []>} : vector<16x32xbf16>, vector<32x256xbf16>, vector<16x256xf32> -> vector<16x256xf32>
    %c0_3 = arith.constant 0 : index
    %c0_4 = arith.constant 0 : index
    %4 = vector.load %arg3[%c0_3, %c0_4] : memref<1x256xf32, #tpu.memory_space<vmem>>, vector<1x256xf32>
    %5 = vector.broadcast %4 : vector<1x256xf32> to vector<16x256xf32>
    %6 = arith.addf %3, %5 : vector<16x256xf32>
    %cst_5 = arith.constant 0.000000e+00 : f32
    %7 = vector.broadcast %cst_5 : f32 to vector<16x256xf32>
    %8 = arith.maximumf %6, %7 : vector<16x256xf32>
    %9 = arith.truncf %8 : vector<16x256xf32> to vector<16x256xbf16>
    %c0_6 = arith.constant 0 : index
    %c0_7 = arith.constant 0 : index
    %10 = vector.load %arg4[%c0_6, %c0_7] : memref<256x256xbf16, #tpu.memory_space<vmem>>, vector<256x256xbf16>
    %cst_8 = arith.constant dense<0.000000e+00> : vector<16x256xf32>
    %11 = tpu.matmul %9, %10, %cst_8 {dimension_numbers = #tpu.dot_dimension_numbers<[1], [0], [0], [1], [0, 0, 1, 1], [], []>} : vector<16x256xbf16>, vector<256x256xbf16>, vector<16x256xf32> -> vector<16x256xf32>
    %c0_9 = arith.constant 0 : index
    %c0_10 = arith.constant 0 : index
    %12 = vector.load %arg5[%c0_9, %c0_10] : memref<1x256xf32, #tpu.memory_space<vmem>>, vector<1x256xf32>
    %13 = vector.broadcast %12 : vector<1x256xf32> to vector<16x256xf32>
    %14 = arith.addf %11, %13 : vector<16x256xf32>
    %cst_11 = arith.constant 0.000000e+00 : f32
    %15 = vector.broadcast %cst_11 : f32 to vector<16x256xf32>
    %16 = arith.maximumf %14, %15 : vector<16x256xf32>
    %c0_12 = arith.constant 0 : index
    %c0_13 = arith.constant 0 : index
    %17 = vector.load %arg6[%c0_12, %c0_13] : memref<1x256xbf16, #tpu.memory_space<vmem>>, vector<1x256xbf16>
    %18 = arith.truncf %16 : vector<16x256xf32> to vector<16x256xbf16>
    %cst_14 = arith.constant dense<0.000000e+00> : vector<1x16xf32>
    %19 = tpu.matmul %17, %18, %cst_14 {dimension_numbers = #tpu.dot_dimension_numbers<[1], [1], [0], [0], [0, 0, 1, 0], [], []>} : vector<1x256xbf16>, vector<16x256xbf16>, vector<1x16xf32> -> vector<1x16xf32>
    %c0_15 = arith.constant 0 : index
    %c0_16 = arith.constant 0 : index
    %20 = memref.load %arg7[%c0_15, %c0_16] : memref<1x1xf32, #tpu.memory_space<smem>>
    %21 = vector.broadcast %20 : f32 to vector<1x16xf32>
    %22 = arith.addf %19, %21 : vector<1x16xf32>
    %23 = vector.shape_cast %22 : vector<1x16xf32> to vector<1x1x16xf32>
    %c0_17 = arith.constant 0 : index
    %c0_18 = arith.constant 0 : index
    %c0_19 = arith.constant 0 : index
    %24 = vector.load %arg8[%c0_17, %c0_18, %c0_19] : memref<1x1x16xf32, #tpu.memory_space<vmem>>, vector<1x1x16xf32>
    tpu.vector_store %arg8[%c0_17, %c0_18, %c0_19], %23 {strides = array<i32>} : memref<1x1x16xf32, #tpu.memory_space<vmem>>, vector<1x1x16xf32>,
    return
  }
  func.func @transform_0(%arg0: i32) -> (i32, i32) {
    %c0_i32 = arith.constant 0 : i32
    %c0_i32_0 = arith.constant 0 : i32
    return %arg0, %c0_i32 : i32, i32
  }
  func.func @transform_1(%arg0: i32) -> (i32, i32) {
    %c0_i32 = arith.constant 0 : i32
    %c0_i32_0 = arith.constant 0 : i32
    %c0_i32_1 = arith.constant 0 : i32
    return %c0_i32, %c0_i32_0 : i32, i32
  }
  func.func @transform_2(%arg0: i32) -> (i32, i32) {
    %c0_i32 = arith.constant 0 : i32
    %c0_i32_0 = arith.constant 0 : i32
    %c0_i32_1 = arith.constant 0 : i32
    return %c0_i32, %c0_i32_0 : i32, i32
  }
  func.func @transform_3(%arg0: i32) -> (i32, i32) {
    %c0_i32 = arith.constant 0 : i32
    %c0_i32_0 = arith.constant 0 : i32
    %c0_i32_1 = arith.constant 0 : i32
    return %c0_i32, %c0_i32_0 : i32, i32
  }
  func.func @transform_4(%arg0: i32) -> (i32, i32) {
    %c0_i32 = arith.constant 0 : i32
    %c0_i32_0 = arith.constant 0 : i32
    %c0_i32_1 = arith.constant 0 : i32
    return %c0_i32, %c0_i32_0 : i32, i32
  }
  func.func @transform_5(%arg0: i32) -> (i32, i32) {
    %c0_i32 = arith.constant 0 : i32
    %c0_i32_0 = arith.constant 0 : i32
    %c0_i32_1 = arith.constant 0 : i32
    return %c0_i32, %c0_i32_0 : i32, i32
  }
  func.func @transform_6(%arg0: i32) -> (i32, i32) {
    %c0_i32 = arith.constant 0 : i32
    %c0_i32_0 = arith.constant 0 : i32
    %c0_i32_1 = arith.constant 0 : i32
    return %c0_i32, %c0_i32_0 : i32, i32
  }
  func.func @transform_7(%arg0: i32) -> (i32, i32, i32) {
    %c0_i32 = arith.constant 0 : i32
    %c0_i32_0 = arith.constant 0 : i32
    %c0_i32_1 = arith.constant 0 : i32
    return %arg0, %c0_i32, %c0_i32_0 : i32, i32, i32
  }
}

</mosaic_0001>

<bundles_post_ra>
// kernel: tpu_custom_call.1
= control target key start
LH: loop header
LB: loop body
LE: loop exit
PB: predicated region body
PF: predicated region fallthrough
CT: control target
= control target key end

     0   :  { %13 = vsyncpa [#allocation4], 0  ;;  %s759_s0 = inlined_call_operand.hbm [shape: f32[16,32], index: 0, kind: input, shape index: {}]   ;;  %s760_s1 = inlined_call_operand.hbm [shape: bf16[32,256], index: 1, kind: input, shape index: {}]   ;;  %s761_s2 = inlined_call_operand.vmem [shape: f32[1,256], index: 2, kind: input, shape index: {}]   ;;  %s762_s3 = inlined_call_operand.hbm [shape: bf16[256,256], index: 3, kind: input, shape index: {}]   ;;  %s763_s4 = inlined_call_operand.vmem [shape: f32[1,256], index: 4, kind: input, shape index: {}]   ;;  %s764_s5 = inlined_call_operand.vmem [shape: bf16[1,256], index: 5, kind: input, shape index: {}]   ;;  %s765_s6 = inlined_call_operand.<no memory space> [shape: f32[1,1], index: 6, kind: input, shape index: {}]   ;;  %s766_s7 = inlined_call_operand.hbm [shape: f32[1,1,16], index: 7, kind: output, shape index: {}]  }
   0x1   :  { %14 = vsyncpa [#allocation7], 0 }
   0x2   :  { %15 = vsyncpa [#allocation5], 0  ;;  %s687_s24 = smov [#allocation6]   ;;  %s688_s26 = smov [#allocation3]  }
   0x3   :  { %s33_s25 = sshll.u32 %s687_s24, 4  ;;  %s21_s27 = sshll.u32 %s688_s26, 4  ;;  %s34_s25 = int_to_ptr.vmem [resolvable:$true] %s33_s25  ;;  %s22_s27 = int_to_ptr.vmem [resolvable:$true] %s21_s27 }
   0x4   :  { %s609_s28 = scalar_lea.vmem %s34_s25, 512  ;;  %p614_p1 = scmp.lt.s32.totalorder %s34_s25, %s34_s25 }
   0x5   :  { %p610_p0 = scmp.ne.s32.totalorder %s34_s25, %s609_s28  ;;  %p615_p2 = scmp.lt.s32.totalorder %s609_s28, %s609_s28 }
   0x7   :  { %p616_p3 = por %p615_p2, %p614_p1 }
   0x9   :  { %p617_p4 = pnand %p616_p3, %p610_p0 }
   0xb   :  { %620 = shalt.err (!%p617_p4)
}
   0xc   :  { %s689_s29 = smov 128   ;;  %s690_s30 = smov 8  }
   0xd   :  { %39 = dma.hbm_to_vmem [thread:$0]  %s760_s1, 512, %s34_s25, [#allocation7], %s689_s29, %s689_s29, %s690_s30  }
   0xe   :  { %s629_s10 = scalar_lea.vmem %s22_s27, 256  ;;  %p634_p6 = scmp.lt.s32.totalorder %s22_s27, %s22_s27 }
   0xf   :  { %p630_p5 = scmp.ne.s32.totalorder %s22_s27, %s629_s10  ;;  %p635_p7 = scmp.lt.s32.totalorder %s629_s10, %s629_s10 }
  0x11   :  { %p636_p8 = por %p635_p7, %p634_p6 }
  0x13   :  { %p637_p9 = pnand %p636_p8, %p630_p5 }
  0x15   :  { %640 = shalt.err (!%p637_p9)
}
  0x16   :  { %27 = dma.hbm_to_vmem [thread:$0]  %s759_s0, 256, %s22_s27, [#allocation4], %s689_s29, %s689_s29, %s690_s30  }
  0x17   :  { %s691_s13 = smov [#allocation8]  }
  0x18   :  { %s47_s14 = sshll.u32 %s691_s13, 4  ;;  %s48_s14 = int_to_ptr.vmem [resolvable:$true] %s47_s14 }
  0x19   :  { %s649_s15 = scalar_lea.vmem %s48_s14, 4096  ;;  %p654_p11 = scmp.lt.s32.totalorder %s48_s14, %s48_s14 }
  0x1a   :  { %p650_p10 = scmp.ne.s32.totalorder %s48_s14, %s649_s15  ;;  %p655_p12 = scmp.lt.s32.totalorder %s649_s15, %s649_s15 }
  0x1c   :  { %p656_p13 = por %p655_p12, %p654_p11 }
  0x1e   :  { %p657_p0 = pnand %p656_p13, %p650_p10 }
  0x20   :  { %660 = shalt.err (!%p657_p0)
}
  0x21   :  { %53 = dma.hbm_to_vmem [thread:$0]  %s762_s3, 4096, %s48_s14, [#allocation7], %s689_s29, %s689_s29, %s690_s30  }
  0x22   :  { %681 = dma.done.wait [#allocation4], 256  }
  0x23   :  { %682 = vsyncadd [#allocation4], 4294967040 }
  0x24   :  { %683 = dma.done.wait [#allocation7], 4608  }
  0x25   :  { %684 = vsyncadd [#allocation7], 4294962688  ;;  %v692_v0 = vmov 0   ;;  %v547_v1 = vld [vmem:[#allocation6 + $0x14] ss:$8 sps:$4 sm:$0xff]   ;;  %vm109_vm0 = vcmask 261120   ;;  %v79_v40 = vlaneseq }
  0x26   :  { %145 = vmatprep.mubr.bf16.mxu0 %v692_v0  ;;  %v549_v2 = vld [vmem:[#allocation6 + $0x10] ss:$8 sps:$4 sm:$0xff]   ;;  %125 = vmatprep.subr.bf16.mxu0 %v547_v1  ;;  %v550_v3 = vld [vmem:[#allocation6 + $0x4] ss:$8 sps:$4 sm:$0xff]   ;;  %v552_v4 = vld [vmem:[#allocation6] ss:$8 sps:$4 sm:$0xff]  }
  0x27   :  { %v70_v5 = vld [vmem:[#allocation3] sm:$0xff]  ;;  %126 = vmatpush1.bf16.msra.mxu0 %v549_v2  ;;  %v71_v6 = vld [vmem:[#allocation3 + $0x8] sm:$0xff]  ;;  %v556_v9 = vld [vmem:[#allocation8 + $0x64] ss:$8 sps:$4 sm:$0xff]   ;;  %v80_v41 = vshrl.u32 %v79_v40, 7  ;;  %s694_s20 = smov [#allocation9]  }
  0x28   :  { %127 = vmatprep.subr.bf16.mxu0 %v550_v3  ;;  %v553_v7 = vld [vmem:[#allocation8 + $0x74] ss:$8 sps:$4 sm:$0xff]   ;;  %v555_v8 = vld [vmem:[#allocation8 + $0x70] ss:$8 sps:$4 sm:$0xff]   ;;  %v72_v10 = vpack.c.bf16 %v71_v6, %v70_v5  ;;  %v558_v11 = vld [vmem:[#allocation8 + $0x60] ss:$8 sps:$4 sm:$0xff]  }
  0x29   :  { %366 = vmatprep.subr.bf16.mxu1 %v553_v7  ;;  %v559_v12 = vld [vmem:[#allocation8 + $0x54] ss:$8 sps:$4 sm:$0xff]   ;;  %v561_v13 = vld [vmem:[#allocation8 + $0x50] ss:$8 sps:$4 sm:$0xff]   ;;  %v562_v14 = vld [vmem:[#allocation8 + $0x44] ss:$8 sps:$4 sm:$0xff]  }
  0x2a   :  { %367 = vmatpush1.bf16.msra.mxu1 %v555_v8  ;;  %v564_v15 = vld [vmem:[#allocation8 + $0x40] ss:$8 sps:$4 sm:$0xff]   ;;  %v565_v16 = vld [vmem:[#allocation8 + $0x34] ss:$8 sps:$4 sm:$0xff]   ;;  %v567_v17 = vld [vmem:[#allocation8 + $0x30] ss:$8 sps:$4 sm:$0xff]  }
  0x2b   :  { %128 = vmatpush1.bf16.msra.mxu0 %v552_v4  ;;  %368 = vmatprep.subr.bf16.mxu1 %v556_v9  ;;  %v568_v18 = vld [vmem:[#allocation8 + $0x24] ss:$8 sps:$4 sm:$0xff]   ;;  %v570_v19 = vld [vmem:[#allocation8 + $0x20] ss:$8 sps:$4 sm:$0xff]   ;;  %v571_v20 = vld [vmem:[#allocation8 + $0x14] ss:$8 sps:$4 sm:$0xff]  }
  0x2c   :  { %v573_v21 = vld [vmem:[#allocation8 + $0x10] ss:$8 sps:$4 sm:$0xff]   ;;  %v574_v22 = vld [vmem:[#allocation8 + $0x4] ss:$8 sps:$4 sm:$0xff]   ;;  %v576_v23 = vld [vmem:[#allocation8] ss:$8 sps:$4 sm:$0xff]  }
  0x2d   :  { %v577_v24 = vld [vmem:[#allocation8 + $0xf4] ss:$8 sps:$4 sm:$0xff]   ;;  %v579_v25 = vld [vmem:[#allocation8 + $0xf0] ss:$8 sps:$4 sm:$0xff]   ;;  %v580_v26 = vld [vmem:[#allocation8 + $0xe4] ss:$8 sps:$4 sm:$0xff]  }
  0x2e   :  { %505 = vmatmul.mubr.msk.bf16.vlgmr.msra.gmra.mxu0 %vm109_vm0, %v72_v10  ;;  %369 = vmatpush1.bf16.msra.mxu1 %v558_v11  ;;  %v582_v27 = vld [vmem:[#allocation8 + $0xe0] ss:$8 sps:$4 sm:$0xff]   ;;  %v583_v28 = vld [vmem:[#allocation8 + $0xd4] ss:$8 sps:$4 sm:$0xff]   ;;  %v585_v29 = vld [vmem:[#allocation8 + $0xd0] ss:$8 sps:$4 sm:$0xff]  }
  0x2f   :  { %370 = vmatprep.subr.bf16.mxu1 %v559_v12  ;;  %v586_v30 = vld [vmem:[#allocation8 + $0xc4] ss:$8 sps:$4 sm:$0xff]   ;;  %v588_v31 = vld [vmem:[#allocation8 + $0xc0] ss:$8 sps:$4 sm:$0xff]   ;;  %v589_v32 = vld [vmem:[#allocation8 + $0xb4] ss:$8 sps:$4 sm:$0xff]  }
  0x30   :  { %v591_v33 = vld [vmem:[#allocation8 + $0xb0] ss:$8 sps:$4 sm:$0xff]   ;;  %v592_v34 = vld [vmem:[#allocation8 + $0xa4] ss:$8 sps:$4 sm:$0xff]   ;;  %v594_v35 = vld [vmem:[#allocation8 + $0xa0] ss:$8 sps:$4 sm:$0xff]  }
  0x31   :  { %v595_v36 = vld [vmem:[#allocation8 + $0x94] ss:$8 sps:$4 sm:$0xff]   ;;  %v597_v37 = vld [vmem:[#allocation8 + $0x90] ss:$8 sps:$4 sm:$0xff]   ;;  %v598_v38 = vld [vmem:[#allocation8 + $0x84] ss:$8 sps:$4 sm:$0xff]  }
  0x32   :  { %371 = vmatpush1.bf16.msra.mxu1 %v561_v13  ;;  %v600_v39 = vld [vmem:[#allocation8 + $0x80] ss:$8 sps:$4 sm:$0xff]   ;;  %v85_v42 = vsub.s32 1, %v80_v41  ;;  %v81_v43 = vsub.s32 0, %v80_v41  ;;  %v77_v44 = vld [vmem:[%s761_s2] sm:$0x3] }
  0x33   :  { %372 = vmatprep.subr.bf16.mxu1 %v562_v14  ;;  %v693_v61 = vmov 1966171168   ;;  %v538_v63 = vld.sshfl [vmem:[%s764_s5] sm:$0x11 pattern:$0x75316420] }
  0x34   :  { %v86_v46 = vrot.slane %v77_v44, %v85_v42  ;;  %v82_v47 = vrot.slane %v77_v44, %v81_v43  ;;  %v428_v62 = vunpack.c.l.s4 %v693_v61  ;;  %v426_v1 = vcombine.high %v538_v63, %v538_v63  ;;  %v194_v5 = vld [vmem:[%s763_s4] sm:$0x3]  ;;  %s491_s21 = sshll.u32 %s694_s20, 4  ;;  %s492_s21 = int_to_ptr.vmem [resolvable:$true] %s491_s21 }
  0x35   :  { %v203_v7 = vrot.slane %v194_v5, %v85_v42  ;;  %v199_v8 = vrot.slane %v194_v5, %v81_v43  ;;  %vm483_vm1 = vcmask 122880   ;;  %s661_s22 = scalar_lea.vmem %s492_s21, 16  ;;  %s665_s23 = scalar_lea.vmem %s492_s21, 32 }
  0x36   :  { %373 = vmatpush1.bf16.msra.mxu1 %v564_v15  ;;  %v429_v0 = vunpack.c.0.s8 %v428_v62  ;;  %p662_p1 = scmp.ne.s32.totalorder %s492_s21, %s661_s22  ;;  %p666_p2 = scmp.lt.s32.totalorder %s492_s21, %s492_s21 }
  0x37   :  { %374 = vmatprep.subr.bf16.mxu1 %v565_v16  ;;  %p667_p3 = scmp.lt.s32.totalorder %s665_s23, %s661_s22 }
  0x38   :  { %v432_v2 = vsub.s32 %v429_v0, %v80_v41 }
  0x39   :  { %p668_p4 = por %p667_p3, %p666_p2 }
  0x3a   :  { %375 = vmatpush1.bf16.msra.mxu1 %v567_v17  ;;  %v440_v3 = vrot.slane %v426_v1, %v432_v2  ;;  %v433_v4 = vrot.slane %v538_v63, %v432_v2 }
  0x3b   :  { %376 = vmatprep.subr.bf16.mxu1 %v568_v18  ;;  %p669_p5 = pnand %p668_p4, %p662_p1 }
  0x3c   :  { %475 = vmatprep.mubr.bf16.mxu0 %v440_v3 }
  0x3e   :  { %377 = vmatpush1.bf16.msra.mxu1 %v570_v19 }
  0x3f   :  { %378 = vmatprep.subr.bf16.mxu1 %v571_v20 }
  0x42   :  { %379 = vmatpush1.bf16.msra.mxu1 %v573_v21 }
  0x43   :  { %380 = vmatprep.subr.bf16.mxu1 %v574_v22  ;;  %v417_v22 = vstv %s765_s6 }
  0x46   :  { %381 = vmatpush1.bf16.msra.mxu1 %v576_v23 }
  0x47   :  { %382 = vmatprep.subr.bf16.mxu1 %v577_v24 }
  0x4a   :  { %383 = vmatpush2.bf16.msra.mxu1 %v579_v25 }
  0x4b   :  { %384 = vmatprep.subr.bf16.mxu1 %v580_v26 }
  0x4e   :  { %385 = vmatpush2.bf16.msra.mxu1 %v582_v27 }
  0x4f   :  { %386 = vmatprep.subr.bf16.mxu1 %v583_v28 }
  0x52   :  { %387 = vmatpush2.bf16.msra.mxu1 %v585_v29 }
  0x53   :  { %388 = vmatprep.subr.bf16.mxu1 %v586_v30 }
  0x56   :  { %389 = vmatpush2.bf16.msra.mxu1 %v588_v31 }
  0x57   :  { %390 = vmatprep.subr.bf16.mxu1 %v589_v32 }
  0x5a   :  { %391 = vmatpush2.bf16.msra.mxu1 %v591_v33 }
  0x5b   :  { %392 = vmatprep.subr.bf16.mxu1 %v592_v34 }
  0x5e   :  { %393 = vmatpush2.bf16.msra.mxu1 %v594_v35 }
  0x5f   :  { %394 = vmatprep.subr.bf16.mxu1 %v595_v36 }
  0x62   :  { %395 = vmatpush2.bf16.msra.mxu1 %v597_v37 }
  0x63   :  { %396 = vmatprep.subr.bf16.mxu1 %v598_v38 }
  0x66   :  { %397 = vmatpush2.bf16.msra.mxu1 %v600_v39 }
  0xee   :  { %v147_v45 = vpop.f32.mrf.mxu0 }
  0xef   :  { %v148_v52 = vadd.f32 %v147_v45, %v82_v47 }
  0xf0   :  { %v149_v48 = vpop.f32.mrf.mxu0 }
  0xf1   :  { %v150_v50 = vadd.f32 %v149_v48, %v86_v46  ;;  %v156_v58 = vmax.f32 %v148_v52, 0.0 }
  0xf2   :  { %v151_v49 = vpop.f32.mrf.mxu0 }
  0xf3   :  { %v152_v51 = vadd.f32 %v151_v49, %v82_v47  ;;  %v157_v56 = vmax.f32 %v150_v50, 0.0 }
  0xf4   :  { %v153_v53 = vpop.f32.mrf.mxu0 }
  0xf5   :  { %v154_v54 = vadd.f32 %v153_v53, %v86_v46  ;;  %v158_v55 = vmax.f32 %v152_v51, 0.0 }
  0xf7   :  { %v159_v57 = vmax.f32 %v154_v54, 0.0  ;;  %v160_v60 = vpack.c.bf16 %v158_v55, %v156_v58 }
  0xf9   :  { %v161_v59 = vpack.c.bf16 %v159_v57, %v157_v56 }
  0xfb   :  { %398 = vmatprep.mubr.bf16.mxu1 %v161_v59 }
  0xfc   :  { %399 = vmatmul.mubr.bf16.vlgmr.msra.gmra.mxu1 %v160_v60 }
 0x1bc   :  { %v400_v6 = vpop.f32.mrf.mxu1 }
 0x1bd   :  { %v401_v13 = vadd.f32 %v400_v6, %v199_v8 }
 0x1be   :  { %v402_v9 = vpop.f32.mrf.mxu1 }
 0x1bf   :  { %v403_v11 = vadd.f32 %v402_v9, %v203_v7  ;;  %v409_v19 = vmax.f32 %v401_v13, 0.0 }
 0x1c0   :  { %v404_v10 = vpop.f32.mrf.mxu1 }
 0x1c1   :  { %v405_v12 = vadd.f32 %v404_v10, %v199_v8  ;;  %v410_v17 = vmax.f32 %v403_v11, 0.0 }
 0x1c2   :  { %v406_v14 = vpop.f32.mrf.mxu1 }
 0x1c3   :  { %v407_v15 = vadd.f32 %v406_v14, %v203_v7  ;;  %v411_v16 = vmax.f32 %v405_v12, 0.0 }
 0x1c5   :  { %v412_v18 = vmax.f32 %v407_v15, 0.0  ;;  %v414_v21 = vpack.c.bf16 %v411_v16, %v409_v19 }
 0x1c7   :  { %v415_v20 = vpack.c.bf16 %v412_v18, %v410_v17 }
 0x1c9   :  { %457 = vmatprep.subr.bf16.mxu0 %v415_v20 }
 0x1ca   :  { %458 = vmatpush1.bf16.xpose.msra.mxu0 %v414_v21 }
 0x1d1   :  { %476 = vmatmul.mubr.bf16.vlgmr.msra.gmra.mxu0 %v433_v4 }
 0x291   :  { %v477_v23 = vpop.f32.mrf.mxu0 }
 0x292   :  { %v478_v24 = vadd.f32 %v477_v23, %v417_v22 }
 0x293   :  { %v479_v25 = vpop.f32.mrf.mxu0 }
 0x294   :  { %484 = vst.msk [vmem:[#allocation9] sm:$0x1] %vm483_vm1, %v478_v24 }
 0x295   :  { %v480_v26 = vpop.f32.mrf.mxu0 }
 0x296   :  { %672 = shalt.err (!%p669_p5)
}
 0x297   :  { %494 = dma.vmem_to_hbm [thread:$0]  %s492_s21, 16, %s766_s7, [#allocation5]   ;;  %v481_v27 = vpop.f32.mrf.mxu0 }
 0x298   :  { %685 = dma.done.wait [#allocation5], 16  }
 0x299   :  { %686 = vsyncadd [#allocation5], 4294967280 }
 0x29a   :  { %498 = vsyncpa [#allocation4], 1 }
 0x29b   :  { %499 = vsyncpa [#allocation7], 1 }
 0x29c   :  { %500 = vsyncpa [#allocation5], 1 }

</bundles_post_ra>
